<compile_context>
chip_gen: v7x
topology: tpu7x:2x2x1
jax: 0.10.0
libtpu: 0.0.40
codegen_flags: <defaults>
</compile_context>

<pallas_src>
import functools

import jax
import jax.numpy as jnp
from jax import lax
from jax.experimental import pallas as pl
from jax.experimental.pallas import tpu as pltpu

ALPHA = 1.0
GAMMA = 2.0   # exploited below as (1 - pt) * (1 - pt)
XENT = 0.1

NUM_SHARDS = 2                       # v7x has 2 TCs; extra shard is free on 1-TC parts
_SUBLANE = {4: 8, 2: 16, 1: 32}      # sublane quantum per itemsize


def focal_cosine_kernel(x_ref, t_ref, out_ref, acc_ref, *, n_total, tile_n):
    i = pl.program_id(1)

    @pl.when(i == 0)
    def _init():
        acc_ref[...] = jnp.zeros_like(acc_ref)

    x = x_ref[...].astype(jnp.float32)            # (tn, C)
    t = t_ref[...]                                # (tn, 1) int32
    tn, c = x.shape

    # target-class mask via in-kernel iota compare (no gather, no f32 one-hot)
    class_ids = lax.broadcasted_iota(jnp.int32, (tn, c), 1)
    mask = class_ids == t                         # (tn, C) bool

    # logit at the target class and per-row squared L2 norm
    x_t = jnp.sum(jnp.where(mask, x, 0.0), axis=-1, keepdims=True)   # (tn, 1)
    norm_sq = jnp.sum(x * x, axis=-1, keepdims=True)                 # (tn, 1)

    # one rsqrt feeds both eps paths (min-clamp == 1/max(norm, eps), no inf)
    inv_norm = lax.rsqrt(jnp.maximum(norm_sq, 1e-30))
    inv8 = jnp.minimum(inv_norm, 1e8)             # cosine_embedding_loss eps
    inv12 = jnp.minimum(inv_norm, 1e12)           # F.normalize eps

    # cosine embedding loss with target=+1 (||onehot|| == 1)
    cosine_loss = 1.0 - x_t * inv8                                   # (tn, 1)

    # cross entropy on L2-normalized logits. Entries of x_n are in [-1, 1],
    # so the log-sum-exp needs no max-stabilization pass.
    x_n = x * inv12                                                  # (tn, C)
    lse = jnp.log(jnp.sum(jnp.exp(x_n), axis=-1, keepdims=True))     # (tn, 1)
    xn_t = x_t * inv12             # == sum(x_n * onehot); same eps, no 2nd reduce
    cent = lse - xn_t                                                # (tn, 1)

    # focal modulation (gamma == 2 -> plain multiply, no pow)
    pt = jnp.exp(-cent)
    one_minus_pt = 1.0 - pt
    focal = ALPHA * one_minus_pt * one_minus_pt * cent               # (tn, 1)

    # combined per-row contribution (linear: mean(cos) + XENT*mean(focal)
    # == mean(cos_i + XENT*focal_i)); mask padded rows to zero.
    row_loss = cosine_loss + XENT * focal                            # (tn, 1)
    block_row0 = (pl.program_id(0) * pl.num_programs(1) + i) * tile_n
    row_ids = lax.broadcasted_iota(jnp.int32, (tn, 1), 0) + block_row0
    valid = row_ids < n_total
    acc_ref[...] += jnp.where(valid, row_loss, 0.0)

    @pl.when(i == pl.num_programs(1) - 1)
    def _finalize():
        out_ref[...] = jnp.sum(acc_ref[...]).reshape(1, 1, 1)


def _vmem_capacity_bytes():
    try:
        return int(pltpu.get_tpu_info().vmem_capacity_bytes)
    except Exception:
        return 64 * 1024 * 1024   # conservative (v7x per-TC figure)


def _pick_tile_n(n, c, itemsize, num_shards):
    """Largest sublane-multiple row tile that fits a generation-aware budget."""
    cap = _vmem_capacity_bytes()
    if cap >= 128 * 1024 * 1024:          # v5e / v6e: 128 MiB VMEM
        vmem_limit = 100 * 1024 * 1024
        x_budget = 80 * 1024 * 1024
    else:                                 # v7x: 64 MiB per TC -> leave headroom
        vmem_limit = 48 * 1024 * 1024
        x_budget = 36 * 1024 * 1024
    quantum = _SUBLANE.get(itemsize, 8)
    # Per-row footprint: double-buffered input tile + ~4 live (tn, C) f32
    # compute slabs + a handful of lane-padded (tn, 1) row vectors (~512 B ea).
    bytes_per_row = 2 * c * itemsize + 4 * c * 4 + 8 * 512
    max_rows = max(quantum, x_budget // bytes_per_row)
    # Don't pad (much) past one tile per shard when N is small.
    per_shard = -(-n // num_shards)
    cap_rows = max(quantum, ((per_shard + quantum - 1) // quantum) * quantum)
    tile_n = min(max_rows, cap_rows, 8192)
    tile_n = max(quantum, (tile_n // quantum) * quantum)
    return tile_n, vmem_limit


def focal_cosine_loss(logits, target, tile_n=None):
    """logits: (N, C) float, target: (N,) int. Returns scalar float32.

    Note: when C < 128 (e.g. the small demo below) every C-wide vector op and
    DMA runs lane-sparse; production callers should keep C a multiple of 128.
    """
    n, c = logits.shape
    itemsize = jnp.dtype(logits.dtype).itemsize
    quantum = _SUBLANE.get(itemsize, 8)
    auto_tile, vmem_limit = _pick_tile_n(n, c, itemsize, NUM_SHARDS)
    if tile_n is None:
        tile_n = auto_tile
    else:
        tile_n = max(quantum, ((tile_n + quantum - 1) // quantum) * quantum)

    steps = max(1, -(-n // (NUM_SHARDS * tile_n)))      # per-shard grid steps
    n_pad = NUM_SHARDS * steps * tile_n

    x = logits
    t2d = target.astype(jnp.int32).reshape(n, 1)
    if n_pad != n:                                      # pad; kernel masks rows
        x = jnp.pad(x, ((0, n_pad - n), (0, 0)))
        t2d = jnp.pad(t2d, ((0, n_pad - n), (0, 0)))

    kernel = functools.partial(focal_cosine_kernel, n_total=n, tile_n=tile_n)

    cost = pl.CostEstimate(
        flops=10 * n_pad * c,
        transcendentals=n_pad * c + 4 * n_pad,
        bytes_accessed=n_pad * (c * itemsize + 4) + NUM_SHARDS * 4,
    )

    partials = pl.pallas_call(
        kernel,
        out_shape=jax.ShapeDtypeStruct((NUM_SHARDS, 1, 1), jnp.float32),
        grid_spec=pltpu.PrefetchScalarGridSpec(
            num_scalar_prefetch=0,
            grid=(NUM_SHARDS, steps),
            in_specs=[
                pl.BlockSpec((tile_n, c), lambda s, i: (s * steps + i, 0)),
                pl.BlockSpec((tile_n, 1), lambda s, i: (s * steps + i, 0)),
            ],
            out_specs=pl.BlockSpec((1, 1, 1), lambda s, i: (s, 0, 0)),
            scratch_shapes=[pltpu.VMEM((tile_n, 1), jnp.float32)],
        ),
        compiler_params=pltpu.CompilerParams(
            dimension_semantics=("parallel", "arbitrary"),
            vmem_limit_bytes=vmem_limit,
        ),
        cost_estimate=cost,
    )(x, t2d)

    return jnp.sum(partials) / jnp.float32(n)


def focal_cosine_loss_ref(logits, target):
    """Pure-JAX reference matching the PyTorch module."""
    x = logits.astype(jnp.float32)
    n, c = x.shape
    onehot = jax.nn.one_hot(target, c, dtype=jnp.float32)
    norm = jnp.sqrt(jnp.sum(x * x, axis=-1))
    x_t = jnp.sum(x * onehot, axis=-1)
    cosine_loss = jnp.mean(1.0 - x_t / jnp.maximum(norm, 1e-8))
    x_n = x / jnp.maximum(norm, 1e-12)[:, None]
    cent = jax.nn.logsumexp(x_n, axis=-1) - jnp.sum(x_n * onehot, axis=-1)
    focal = ALPHA * (1.0 - jnp.exp(-cent)) ** GAMMA * cent
    return cosine_loss + XENT * jnp.mean(focal)


if __name__ == "__main__":
    key = jax.random.PRNGKey(0)
    k1, k2 = jax.random.split(key)
    N, C = 64, 32
    logits = jax.random.normal(k1, (N, C), dtype=jnp.float32)
    target = jax.random.randint(k2, (N,), 0, C, dtype=jnp.int32)

    # small explicit tile -> grid (2 shards, 2 steps): exercises both the
    # parallel shard axis and the multi-step accumulator path
    out = focal_cosine_loss(logits, target, tile_n=16)
    jax.block_until_ready(out)

    ref = focal_cosine_loss_ref(logits, target)
    assert jnp.allclose(out, ref, atol=1e-5, rtol=1e-5), (out, ref)
    print("KERNEL_OK")
</pallas_src>

<mosaic_0001>
module attributes {stable_mosaic.version = 11 : i64} {
  func.func @focal_cosine_kernel(%arg0: i32, %arg1: i32, %arg2: memref<16x32xf32, #tpu.memory_space<vmem>>, %arg3: memref<16x1xi32, #tpu.memory_space<vmem>>, %arg4: memref<1x1x1xf32, #tpu.memory_space<vmem>>, %arg5: memref<16x1xf32, #tpu.memory_space<vmem>>) attributes {dimension_semantics = [#tpu.dimension_semantics<parallel>, #tpu.dimension_semantics<arbitrary>], iteration_bounds = array<i64: 2, 2>, scalar_prefetch = 0 : i64, scratch_operands = 1 : i64, tpu.core_type = #tpu.core_type<tc>, window_params = [{transform_indices = @transform_0, window_bounds = array<i64: 16, 32>}, {transform_indices = @transform_1, window_bounds = array<i64: 16, 1>}, {transform_indices = @transform_2, window_bounds = array<i64: 1, 1, 1>}]} {
    %c0_i32 = arith.constant 0 : i32
    %0 = arith.cmpi eq, %arg1, %c0_i32 : i32
    %1 = arith.extui %0 : i1 to i32
    %c0_i32_0 = arith.constant 0 : i32
    %2 = arith.cmpi ne, %1, %c0_i32_0 : i32
    scf.if %2 {
      %cst_21 = arith.constant 0.000000e+00 : f32
      %61 = vector.broadcast %cst_21 : f32 to vector<16x1xf32>
      %c0_22 = arith.constant 0 : index
      %c0_23 = arith.constant 0 : index
      %62 = vector.load %arg5[%c0_22, %c0_23] : memref<16x1xf32, #tpu.memory_space<vmem>>, vector<16x1xf32>
      tpu.vector_store %arg5[%c0_22, %c0_23], %61 {strides = array<i32>} : memref<16x1xf32, #tpu.memory_space<vmem>>, vector<16x1xf32>,
    } else {
    }
    %c0 = arith.constant 0 : index
    %c0_1 = arith.constant 0 : index
    %3 = vector.load %arg2[%c0, %c0_1] : memref<16x32xf32, #tpu.memory_space<vmem>>, vector<16x32xf32>
    %c0_2 = arith.constant 0 : index
    %c0_3 = arith.constant 0 : index
    %4 = vector.load %arg3[%c0_2, %c0_3] : memref<16x1xi32, #tpu.memory_space<vmem>>, vector<16x1xi32>
    %5 = tpu.iota {dimensions = array<i32: 1>} : vector<16x32xi32>
    %6 = vector.broadcast %4 : vector<16x1xi32> to vector<16x32xi32>
    %7 = arith.cmpi eq, %5, %6 : vector<16x32xi32>
    %cst = arith.constant 0.000000e+00 : f32
    %8 = vector.broadcast %cst : f32 to vector<16x32xf32>
    %9 = arith.select %7, %3, %8 : vector<16x32xi1>, vector<16x32xf32>
    %cst_4 = arith.constant dense<0.000000e+00> : vector<16xf32>
    %10 = vector.multi_reduction <add>, %9, %cst_4 [1] : vector<16x32xf32> to vector<16xf32>
    %11 = vector.shape_cast %10 : vector<16xf32> to vector<16x1xf32>
    %12 = arith.mulf %3, %3 : vector<16x32xf32>
    %cst_5 = arith.constant dense<0.000000e+00> : vector<16xf32>
    %13 = vector.multi_reduction <add>, %12, %cst_5 [1] : vector<16x32xf32> to vector<16xf32>
    %14 = vector.shape_cast %13 : vector<16xf32> to vector<16x1xf32>
    %cst_6 = arith.constant 1.000000e-30 : f32
    %15 = vector.broadcast %cst_6 : f32 to vector<16x1xf32>
    %16 = arith.maximumf %14, %15 : vector<16x1xf32>
    %17 = math.rsqrt %16 : vector<16x1xf32>
    %cst_7 = arith.constant 1.000000e+08 : f32
    %18 = vector.broadcast %cst_7 : f32 to vector<16x1xf32>
    %19 = arith.minimumf %17, %18 : vector<16x1xf32>
    %cst_8 = arith.constant 9.99999995E+11 : f32
    %20 = vector.broadcast %cst_8 : f32 to vector<16x1xf32>
    %21 = arith.minimumf %17, %20 : vector<16x1xf32>
    %22 = arith.mulf %11, %19 : vector<16x1xf32>
    %cst_9 = arith.constant 1.000000e+00 : f32
    %23 = vector.broadcast %cst_9 : f32 to vector<16x1xf32>
    %24 = arith.subf %23, %22 : vector<16x1xf32>
    %25 = vector.broadcast %21 : vector<16x1xf32> to vector<16x32xf32>
    %26 = arith.mulf %3, %25 : vector<16x32xf32>
    %27 = math.exp %26 : vector<16x32xf32>
    %cst_10 = arith.constant dense<0.000000e+00> : vector<16xf32>
    %28 = vector.multi_reduction <add>, %27, %cst_10 [1] : vector<16x32xf32> to vector<16xf32>
    %29 = vector.shape_cast %28 : vector<16xf32> to vector<16x1xf32>
    %30 = math.log %29 : vector<16x1xf32>
    %31 = arith.mulf %11, %21 : vector<16x1xf32>
    %32 = arith.subf %30, %31 : vector<16x1xf32>
    %cst_11 = arith.constant 0.000000e+00 : f32
    %33 = vector.broadcast %cst_11 : f32 to vector<16x1xf32>
    %34 = arith.subf %33, %32 : vector<16x1xf32>
    %35 = math.exp %34 : vector<16x1xf32>
    %cst_12 = arith.constant 1.000000e+00 : f32
    %36 = vector.broadcast %cst_12 : f32 to vector<16x1xf32>
    %37 = arith.subf %36, %35 : vector<16x1xf32>
    %cst_13 = arith.constant 1.000000e+00 : f32
    %38 = vector.broadcast %cst_13 : f32 to vector<16x1xf32>
    %39 = arith.mulf %38, %37 : vector<16x1xf32>
    %40 = arith.mulf %39, %37 : vector<16x1xf32>
    %41 = arith.mulf %40, %32 : vector<16x1xf32>
    %cst_14 = arith.constant 1.000000e-01 : f32
    %42 = vector.broadcast %cst_14 : f32 to vector<16x1xf32>
    %43 = arith.mulf %42, %41 : vector<16x1xf32>
    %44 = arith.addf %24, %43 : vector<16x1xf32>
    %c2_i32 = arith.constant 2 : i32
    %45 = arith.muli %arg0, %c2_i32 : i32
    %46 = arith.addi %45, %arg1 : i32
    %c16_i32 = arith.constant 16 : i32
    %47 = arith.muli %46, %c16_i32 : i32
    %48 = tpu.iota {dimensions = array<i32: 0>} : vector<16x1xi32>
    %49 = vector.broadcast %47 : i32 to vector<16x1xi32>
    %50 = arith.addi %48, %49 : vector<16x1xi32>
    %c64_i32 = arith.constant 64 : i32
    %51 = vector.broadcast %c64_i32 : i32 to vector<16x1xi32>
    %52 = arith.cmpi slt, %50, %51 : vector<16x1xi32>
    %c0_15 = arith.constant 0 : index
    %c0_16 = arith.constant 0 : index
    %53 = vector.load %arg5[%c0_15, %c0_16] : memref<16x1xf32, #tpu.memory_space<vmem>>, vector<16x1xf32>
    %cst_17 = arith.constant 0.000000e+00 : f32
    %54 = vector.broadcast %cst_17 : f32 to vector<16x1xf32>
    %55 = arith.select %52, %44, %54 : vector<16x1xi1>, vector<16x1xf32>
    %56 = arith.addf %53, %55 : vector<16x1xf32>
    %c0_18 = arith.constant 0 : index
    %c0_19 = arith.constant 0 : index
    %57 = vector.load %arg5[%c0_18, %c0_19] : memref<16x1xf32, #tpu.memory_space<vmem>>, vector<16x1xf32>
    tpu.vector_store %arg5[%c0_18, %c0_19], %56 {strides = array<i32>} : memref<16x1xf32, #tpu.memory_space<vmem>>, vector<16x1xf32>,
    %c1_i32 = arith.constant 1 : i32
    %58 = arith.cmpi eq, %arg1, %c1_i32 : i32
    %59 = arith.extui %58 : i1 to i32
    %c0_i32_20 = arith.constant 0 : i32
    %60 = arith.cmpi ne, %59, %c0_i32_20 : i32
    scf.if %60 {
      %c0_21 = arith.constant 0 : index
      %c0_22 = arith.constant 0 : index
      %61 = vector.load %arg5[%c0_21, %c0_22] : memref<16x1xf32, #tpu.memory_space<vmem>>, vector<16x1xf32>
      %62 = vector.shape_cast %61 : vector<16x1xf32> to vector<1x16x1xf32>
      %cst_23 = arith.constant dense<0.000000e+00> : vector<1xf32>
      %63 = vector.multi_reduction <add>, %62, %cst_23 [1, 2] : vector<1x16x1xf32> to vector<1xf32>
      %64 = vector.shape_cast %63 : vector<1xf32> to vector<1x1x1xf32>
      %65 = vector.extract %64[0, 0, 0] : f32 from vector<1x1x1xf32>
      %66 = vector.broadcast %65 : f32 to vector<1x1x1xf32>
      %c0_24 = arith.constant 0 : index
      %c0_25 = arith.constant 0 : index
      %c0_26 = arith.constant 0 : index
      %67 = vector.load %arg4[%c0_24, %c0_25, %c0_26] : memref<1x1x1xf32, #tpu.memory_space<vmem>>, vector<1x1x1xf32>
      tpu.vector_store %arg4[%c0_24, %c0_25, %c0_26], %66 {strides = array<i32>} : memref<1x1x1xf32, #tpu.memory_space<vmem>>, vector<1x1x1xf32>,
    } else {
    }
    return
  }
  func.func @transform_0(%arg0: i32, %arg1: i32) -> (i32, i32) {
    %c2_i32 = arith.constant 2 : i32
    %0 = arith.muli %arg0, %c2_i32 : i32
    %1 = arith.addi %0, %arg1 : i32
    %c0_i32 = arith.constant 0 : i32
    %c0_i32_0 = arith.constant 0 : i32
    return %1, %c0_i32 : i32, i32
  }
  func.func @transform_1(%arg0: i32, %arg1: i32) -> (i32, i32) {
    %c2_i32 = arith.constant 2 : i32
    %0 = arith.muli %arg0, %c2_i32 : i32
    %1 = arith.addi %0, %arg1 : i32
    %c0_i32 = arith.constant 0 : i32
    %c0_i32_0 = arith.constant 0 : i32
    return %1, %c0_i32 : i32, i32
  }
  func.func @transform_2(%arg0: i32, %arg1: i32) -> (i32, i32, i32) {
    %c0_i32 = arith.constant 0 : i32
    %c0_i32_0 = arith.constant 0 : i32
    %c0_i32_1 = arith.constant 0 : i32
    return %arg0, %c0_i32, %c0_i32_0 : i32, i32, i32
  }
}

</mosaic_0001>

<bundles_post_ra>
// kernel: tpu_custom_call.1
= control target key start
LH: loop header
LB: loop body
LE: loop exit
PB: predicated region body
PF: predicated region fallthrough
CT: control target
= control target key end

     0   :  { %s541_s9 = smov 0   ;;  %s543_s10 = smov 0   ;;  %s622_s0 = inlined_call_operand.vmem [shape: f32[64,32], index: 0, kind: input, shape index: {}]   ;;  %s623_s1 = inlined_call_operand.vmem [shape: s32[64,1], index: 1, kind: input, shape index: {}]   ;;  %s624_s2 = inlined_call_operand.vmem [shape: f32[2,1,1], index: 2, kind: output, shape index: {}]  }
   0x1   :  { %s545_s11 = smov 0   ;;  %s547_s12 = smov 0  }
   0x2   :  { %s549_s13 = smov 0  }
   0x3 LB: > { %s21_s14 = sadd.s32 1, %s514_s11  ;;  %s24_s15 = sadd.s32 1, %s518_s12  ;;  %s522_s13 = sphi %s549_s13, %s12_s13   ;;  %s518_s12 = sphi %s547_s12, %s628_s12   ;;  %s514_s11 = sphi %s545_s11, %s627_s11   ;;  %s510_s10 = sphi %s543_s10, %s626_s10   ;;  %s506_s9 = sphi %s541_s9, %s625_s9  }
   0x4   : > { %p22_p0 = scmp.ge.s32.totalorder %s21_s14, 2  ;;  %p409_p1 = scmp.ge.s32.totalorder %s522_s13, 1 }
   0x5   : > { %p152_p2 = scmp.lt.s32.totalorder %s522_s13, 5 }
   0x6   : > { %s630_s14 = smov (%p22_p0, %s21_s14), 0  ;;  %s632_s15 = smov (!%p22_p0, %s24_s15), %s518_s12 }
   0x7   : > { %p153_p3 = pnand %p409_p1, %p152_p2  ;;  %p26_p4 = scmp.ge.s32.totalorder %s632_s15, 2 }
   0x8   : > { %s410_s16 = sshll.u32 (!%p153_p3), %s510_s10, 1  ;;  %p201_p5 = scmp.lt.s32.totalorder (!%p153_p3), %s510_s10, 1 }
   0x9   : > { %s634_s15 = smov (%p26_p4, %s632_s15), 0  ;;  %156 = sbr.rel (%p153_p3) target bundleno = 609 (0x261), region = 28 }
   0xa   : > { %s574_s17 = sadd.s32 (!%p153_p3), %s506_s9, %s410_s16  ;;  %p416_p7 = scmp.ne.s32.totalorder (!%p153_p3), %s506_s9, 0 }
   0xb   : > { %s411_s18 = sshll.u32 (!%p153_p3), %s574_s17, 1 }
   0xc   : > { %p184_p6 = scmp.lt.s32.totalorder (!%p153_p3), %s411_s18, 7 }
  0x10   : > { %s636_s10 = smov (!%p201_p5, %s510_s10), 1  ;;  %s638_s18 = smov (!%p184_p6, %s411_s18), 7 }
  0x11   : > { %s203_s21 = scalar_lea.vmem %s624_s2, %s636_s10  ;;  %s412_s22 = sshll.u32 %s638_s18, 3  ;;  %vm208_vm0 = vcmask (!%p416_p7), 7168   ;;  %v524_v0 = vmov (!%p416_p7), 0.0  }
  0x12   : > { %s187_s25 = scalar_lea.vmem %s622_s0, %s412_s22  ;;  %s197_s28 = scalar_lea.vmem %s623_s1, %s412_s22  ;;  %209 = vst.msk [vmem:[#allocation2] sm:$0xff] (!%p416_p7), %vm208_vm0, %v524_v0  ;;  %210 = vst.msk [vmem:[#allocation2 + $0x8] sm:$0xff] (!%p416_p7), %vm208_vm0, %v524_v0 }
  0x13   : > { %207 = sbr.rel (%p416_p7) target bundleno = 26 (0x1a), region = 32 }
  0x1a PF: > { %v211_v1 = vld [vmem:[%s187_s25] sm:$0xff]  ;;  %vm227_vm1 = vcmask 261120   ;;  %v212_v2 = vld [vmem:[%s187_s25 + $0x8] sm:$0xff]  ;;  %v525_v6 = vmov 0   ;;  %v215_v20 = vlaneseq  ;;  %s418_s29 = sshll.u32 %s574_s17, 4  ;;  %vm307_vm5 = vcmask 7168  }
  0x1b   : > { %v213_v3 = vld [vmem:[%s197_s28] sm:$0xff]  ;;  %v234_v4 = vmul.f32 %v211_v1, %v211_v1  ;;  %v235_v5 = vmul.f32 %v212_v2, %v212_v2  ;;  %466 = vset.pattern.permute.xlu1 %v525_v6  ;;  %467 = vset.pattern.permute.xlu0 %v525_v6  ;;  %v214_v8 = vld [vmem:[%s197_s28 + $0x8] sm:$0xff]  ;;  %v296_v53 = vstv %s418_s29  ;;  %p419_p8 = scmp.ne.s32.totalorder %s506_s9, 1 }
  0x1c   : > { %218 = vperm.xlu1 %466, %v213_v3   ;;  %v216_v24 = vand.u32 127, %v215_v20  ;;  %v294_v51 = vshrl.u32 %v215_v20, 7  ;;  %vm329_vm7 = vcmask (!%p419_p8), 0  }
  0x1d   : > { %v236_v7 = vsel %vm227_vm1, %v234_v4, 0.0  ;;  %v239_v9 = vsel %vm227_vm1, %v235_v5, 0.0  ;;  %v301_v4 = vld [vmem:[#allocation2] sm:$0xff] }
  0x1e   : > { %237 = vadd.xlane.f32.xlu0 %v236_v7  ;;  %v297_v58 = vadd.s32 %v296_v53, %v294_v51  ;;  %v295_v59 = vadd.s32 8, %v294_v51 }
  0x20   : > { %221 = vperm.xlu1 %466, %v214_v8   ;;  %vm299_vm4 = vcmp.lt.s32.totalorder %v297_v58, 64  ;;  %v298_v3 = vadd.s32 %v296_v53, %v295_v59 }
  0x22   : > { %240 = vadd.xlane.f32.xlu0 %v239_v9  ;;  %vm300_vm6 = vcmp.lt.s32.totalorder %v298_v3, 64 }
  0x9b   : > { %v219_v22 = vpop.permute.xlu1 %218 }
  0x9c   : > { %vm223_vm2 = vcmp.eq.s32.totalorder %v216_v24, %v219_v22 }
  0x9d   : > { %v225_v27 = vsel %vm223_vm2, %v211_v1, 0.0 }
  0x9e   : > { %v228_v29 = vsel %vm227_vm1, %v225_v27, 0.0 }
  0x9f   : > { %v222_v25 = vpop.permute.xlu1 %221 }
  0xa0   : > { %vm224_vm3 = vcmp.eq.s32.totalorder %v216_v24, %v222_v25 }
  0xa1   : > { %v226_v31 = vsel %vm224_vm3, %v212_v2, 0.0 }
  0xa2   : > { %v231_v33 = vsel %vm227_vm1, %v226_v31, 0.0 }
  0xab   : > { %v238_v10 = vpop.xlane.xlu0 %237 }
  0xac   : > { %v242_v11 = vmax.f32 %v238_v10, 1e-30 }
  0xae   : > { %468 = vrsqrt.f32 %v242_v11  ;;  %v302_v11 = vld [vmem:[#allocation2 + $0x8] sm:$0xff] }
  0xaf   : > { %v241_v12 = vpop.xlane.xlu0 %240 }
  0xb0   : > { %v243_v13 = vmax.f32 %v241_v12, 1e-30 }
  0xb2   : > { %470 = vrsqrt.f32 %v243_v13 }
  0xb8   : > { %v469_v14 = vpop.eup %468 }
  0xb9   : > { %v248_v15 = vmin.f32 %v469_v14, 1e+12  ;;  %v246_v52 = vmin.f32 %v469_v14, 1e+08 }
  0xbb   : > { %v254_v16 = vmul.f32 %v248_v15, %v211_v1 }
  0xbc   : > { %v471_v17 = vpop.eup %470 }
  0xbd   : > { %v249_v18 = vmin.f32 %v471_v17, 1e+12  ;;  %v256_v19 = vmul.f32 1.442695, %v254_v16  ;;  %v247_v61 = vmin.f32 %v471_v17, 1e+08 }
  0xbf   : > { %472 = vpow2.f32 %v256_v19  ;;  %v255_v21 = vmul.f32 %v249_v18, %v212_v2 }
  0xc1   : > { %v258_v23 = vmul.f32 1.442695, %v255_v21 }
  0xc3   : > { %474 = vpow2.f32 %v258_v23 }
  0xc9   : > { %v473_v26 = vpop.eup %472 }
  0xca   : > { %v260_v28 = vsel %vm227_vm1, %v473_v26, 0.0 }
  0xcb   : > { %261 = vadd.xlane.f32.xlu0 %v260_v28 }
  0xcd   : > { %v475_v30 = vpop.eup %474 }
  0xce   : > { %v263_v32 = vsel %vm227_vm1, %v475_v30, 0.0 }
  0xcf   : > { %264 = vadd.xlane.f32.xlu1 %v263_v32  ;;  %229 = vadd.xlane.f32.xlu0 %v228_v29 }
  0xd3   : > { %232 = vadd.xlane.f32.xlu0 %v231_v33 }
 0x158   : > { %v262_v34 = vpop.xlane.xlu0 %261 }
 0x159   : > { %476 = vlog2.f32 %v262_v34 }
 0x15c   : > { %v265_v35 = vpop.xlane.xlu1 %264  ;;  %v230_v36 = vpop.xlane.xlu0 %229 }
 0x15d   : > { %478 = vlog2.f32 %v265_v35  ;;  %v270_v39 = vmul.f32 %v248_v15, %v230_v36  ;;  %v250_v55 = vmul.f32 %v246_v52, %v230_v36 }
 0x15f   : > { %v252_v63 = vsub.f32 1.0, %v250_v55 }
 0x160   : > { %v233_v40 = vpop.xlane.xlu0 %232 }
 0x161   : > { %v271_v45 = vmul.f32 %v249_v18, %v233_v40  ;;  %v251_v1 = vmul.f32 %v247_v61, %v233_v40 }
 0x163   : > { %v477_v37 = vpop.eup %476  ;;  %v253_v8 = vsub.f32 1.0, %v251_v1 }
 0x164   : > { %v267_v38 = vmul.f32 0.6931472, %v477_v37 }
 0x166   : > { %v272_v41 = vsub.f32 %v267_v38, %v270_v39 }
 0x167   : > { %v479_v42 = vpop.eup %478 }
 0x168   : > { %v269_v43 = vmul.f32 0.6931472, %v479_v42  ;;  %v274_v44 = vsub.f32 0.0, %v272_v41 }
 0x16a   : > { %v276_v46 = vmul.f32 1.442695, %v274_v44  ;;  %v273_v47 = vsub.f32 %v269_v43, %v271_v45 }
 0x16c   : > { %480 = vpow2.f32 %v276_v46  ;;  %v275_v48 = vsub.f32 0.0, %v273_v47 }
 0x16e   : > { %v278_v49 = vmul.f32 1.442695, %v275_v48 }
 0x170   : > { %482 = vpow2.f32 %v278_v49 }
 0x176   : > { %v481_v50 = vpop.eup %480 }
 0x177   : > { %v280_v54 = vsub.f32 1.0, %v481_v50 }
 0x179   : > { %v282_v56 = vmul.f32 %v280_v54, %v280_v54 }
 0x17a   : > { %v483_v57 = vpop.eup %482 }
 0x17b   : > { %v284_v60 = vmul.f32 %v282_v56, %v272_v41  ;;  %v281_v62 = vsub.f32 1.0, %v483_v57 }
 0x17d   : > { %v286_v0 = vmul.f32 0.1, %v284_v60  ;;  %v283_v2 = vmul.f32 %v281_v62, %v281_v62 }
 0x17f   : > { %v288_v5 = vadd.f32 %v286_v0, %v252_v63  ;;  %v285_v6 = vmul.f32 %v283_v2, %v273_v47 }
 0x181   : > { %v303_v7 = vsel %vm299_vm4, %v288_v5, 0.0  ;;  %v287_v9 = vmul.f32 0.1, %v285_v6 }
 0x182   : > { %v305_v10 = vadd.f32 %v303_v7, %v301_v4  ;;  %313 = sbr.rel (%p419_p8) target bundleno = 609 (0x261), region = 36 }
 0x183   : > { %v289_v12 = vadd.f32 %v287_v9, %v253_v8 }
 0x184   : > { %308 = vst.msk [vmem:[#allocation2] sm:$0xff] %vm307_vm5, %v305_v10 }
 0x185   : > { %v304_v13 = vsel %vm300_vm6, %v289_v12, 0.0 }
 0x186   : > { %v306_v14 = vadd.f32 %v304_v13, %v302_v11 }
 0x188   : > { %309 = vst.msk [vmem:[#allocation2 + $0x8] sm:$0xff] %vm307_vm5, %v306_v14 }
 0x18b   : > { %v314_v15 = vld [vmem:[#allocation2] sm:$0xff] }
 0x18c   : > { %v316_v17 = vsel %vm307_vm5, %v314_v15, 0.0 }
 0x18f   : > { %v315_v16 = vld [vmem:[#allocation2 + $0x8] sm:$0xff] }
 0x190   : > { %v317_v18 = vsel %vm307_vm5, %v315_v16, 0.0 }
 0x191   : > { %v318_v19 = vadd.f32 %v317_v18, %v316_v17 }
 0x193   : > { %319 = vadd.xlane.f32.xlu0 %v318_v19 }
 0x220   : > { %v320_v20 = vpop.xlane.xlu0 %319 }
 0x221   : > { %v321_v21 = vrot.slane %v320_v20, 4 }
 0x223   : > { %v322_v22 = vadd.f32 %v321_v21, %v320_v20 }
 0x225   : > { %v323_v23 = vrot.slane %v322_v22, 2 }
 0x227   : > { %v324_v24 = vadd.f32 %v323_v23, %v322_v22 }
 0x229   : > { %v325_v25 = vrot.slane %v324_v24, 1 }
 0x22b   : > { %v326_v26 = vadd.f32 %v325_v25, %v324_v24 }
 0x22d   : > { %422 = vpush %v326_v26 }
 0x25e   : > { %s423_s30 = spop %422 }
 0x25f   : > { %v328_v27 = vstv %s423_s30 }
 0x260   : > { %330 = vst.msk [vmem:[%s203_s21] sm:$0x1] %vm329_vm7, %v328_v27 }
 0x261 PF: > { %s12_s13 = sadd.s32 1, %s522_s13   ;;  %s625_s9 = smov %s514_s11 }
 0x262   : > { %p9_p9 = scmp.ge.s32.totalorder %s12_s13, 6   ;;  %s626_s10 = smov %s518_s12 }
 0x263   : > { %s627_s11 = smov %s630_s14  ;;  %s628_s12 = smov %s634_s15 }
 0x264   :  { %11 = sbr.rel (!%p9_p9) target bundleno = 3 (0x3), region = 69 }

</bundles_post_ra>
